<compile_context>
chip_gen: v7x
topology: tpu7x:2x2x1
jax: 0.10.0
libtpu: 0.0.40
codegen_flags: <defaults>
</compile_context>

<pallas_src>
import functools

import jax
import jax.numpy as jnp
from jax.experimental import pallas as pl
from jax.experimental.pallas import tpu as pltpu


def _pam_kernel(x_full_ref, x_tile_ref, w_ref, b_ref, gamma_ref, out_ref,
                qt_s, k_s, v_s, *, compute_dtype):
    """One (batch sample, query row-tile) pair per grid step.

    x_full_ref: (1, C, L)         native dtype (whole sample, projections only)
    x_tile_ref: (1, C, TQ)        native dtype (residual tile)
    w_ref     : (2*Cq_pad+C, C)   f32 stacked [wq; wk; wv] (q/k rows padded to 8)
    b_ref     : (2*Cq_pad+C, 1)   f32 stacked biases
    gamma_ref : (1, 1)            f32 SMEM scalar
    out_ref   : (1, C, TQ)        native dtype
    qt_s      : (L, Cq)           compute_dtype scratch (q, transposed)
    k_s       : (Cq, L)           compute_dtype scratch
    v_s       : (L, C)            compute_dtype scratch (v, transposed)
    """
    f32 = jnp.float32
    qi = pl.program_id(1)
    TQ = out_ref.shape[2]
    C = out_ref.shape[1]
    Cq = qt_s.shape[1]
    Cq_pad = (w_ref.shape[0] - C) // 2

    # ---- fused QKV projection, once per sample (first query tile) ----------
    @pl.when(qi == 0)
    def _():
        proj = jnp.dot(w_ref[...], x_full_ref[0].astype(f32),
                       preferred_element_type=f32) + b_ref[...]          # (C_all, L)
        qt_s[...] = proj[:Cq, :].T.astype(compute_dtype)                 # (L, Cq)
        k_s[...] = proj[Cq_pad:Cq_pad + Cq, :].astype(compute_dtype)     # (Cq, L)
        v_s[...] = proj[2 * Cq_pad:, :].T.astype(compute_dtype)          # (L, C)

    # ---- one (TQ, L) attention row-tile -------------------------------------
    start = pl.multiple_of(qi * TQ, TQ)
    q_tile = qt_s[pl.ds(start, TQ), :]                                   # (TQ, Cq)
    energy = jnp.dot(q_tile, k_s[...], preferred_element_type=f32)       # (TQ, L)

    m = jnp.max(energy, axis=-1, keepdims=True)
    e = jnp.exp(energy - m)                                              # unnormalized
    row_sum = jnp.sum(e, axis=-1, keepdims=True)                         # (TQ, 1)

    # PV matmul in canonical (M,K)@(K,N) form; softmax normalization deferred
    # and fused with gamma into one per-row scale.
    pv = jnp.dot(e.astype(compute_dtype), v_s[...],
                 preferred_element_type=f32)                             # (TQ, C)
    scale = gamma_ref[0, 0] * pl.reciprocal(row_sum, approx=True)        # (TQ, 1)
    out_tile = (pv * scale).T                                            # (C, TQ)

    out_ref[0] = (out_tile + x_tile_ref[0].astype(f32)).astype(out_ref.dtype)


def _round_up(n, m):
    return ((n + m - 1) // m) * m


def _choose_tq(L, max_tq=512):
    """Query-tile length: full L when small, else a 128-multiple divisor
    (the (8,128) BlockSpec rule requires TQ % 128 == 0 unless TQ == L)."""
    if L <= max_tq:
        return L
    for cand in (512, 384, 256, 128):
        if cand <= max_tq and L % cand == 0:
            return cand
    # TODO(synk): pad + mask the query axis for L with no 128-multiple divisor.
    return L


def pam_module_forward(x, wq, bq, wk, bk, wv, bv, gamma, *,
                       compute_dtype=jnp.bfloat16, max_tq=512):
    """x: (B, C, L).  Conv1d(k=1) params in PyTorch convention (kernel dim
    squeezed): wq/wk: (C//8, C), bq/bk: (C//8,), wv: (C, C), bv: (C,),
    gamma: scalar.  Returns (B, C, L) in x.dtype.

    On v7x (64 MiB VMEM/TC) pass a smaller max_tq (e.g. 256) for very large L.
    """
    B, C, L = x.shape
    Cq = wq.shape[0]
    Cq_pad = _round_up(Cq, 8)
    C_all = 2 * Cq_pad + C

    # Fused, 8-row-aligned stacked 1x1-conv weights / biases (f32).
    w_all = jnp.zeros((C_all, C), jnp.float32)
    w_all = w_all.at[:Cq].set(wq.astype(jnp.float32))
    w_all = w_all.at[Cq_pad:Cq_pad + Cq].set(wk.astype(jnp.float32))
    w_all = w_all.at[2 * Cq_pad:].set(wv.astype(jnp.float32))
    b_all = jnp.zeros((C_all, 1), jnp.float32)
    b_all = b_all.at[:Cq, 0].set(bq.astype(jnp.float32))
    b_all = b_all.at[Cq_pad:Cq_pad + Cq, 0].set(bk.astype(jnp.float32))
    b_all = b_all.at[2 * Cq_pad:, 0].set(bv.astype(jnp.float32))
    gamma2 = jnp.asarray(gamma, dtype=jnp.float32).reshape(1, 1)

    TQ = _choose_tq(L, max_tq=max_tq)
    n_q = L // TQ

    # Per-step VMEM footprint estimate -> only override the scoped limit when
    # it would exceed the conservative default (16 MiB on v5e); cap at 48 MiB.
    xb = jnp.dtype(x.dtype).itemsize
    cb = jnp.dtype(compute_dtype).itemsize
    est_bytes = (
        2 * C * L * xb                        # x_full slab (+ spare buffer)
        + 2 * 2 * C * TQ * xb                 # x_tile + out tiles, double-buffered
        + 2 * (int(w_all.size) + int(b_all.size)) * 4   # stacked weights/bias
        + (2 * L * Cq + L * C) * cb           # q/k/v scratch
        + 4 * TQ * L * 4                      # energy / exp temporaries (f32)
    )
    vmem_limit = None
    if est_bytes > 16 * 2**20:
        vmem_limit = int(min(est_bytes * 5 // 4, 48 * 2**20))

    kernel = functools.partial(_pam_kernel, compute_dtype=compute_dtype)
    return pl.pallas_call(
        kernel,
        out_shape=jax.ShapeDtypeStruct((B, C, L), x.dtype),
        grid=(B, n_q),
        in_specs=[
            pl.BlockSpec((1, C, L), lambda b, q: (b, 0, 0)),    # x: whole sample
            pl.BlockSpec((1, C, TQ), lambda b, q: (b, 0, q)),   # x: residual tile
            pl.BlockSpec((C_all, C), lambda b, q: (0, 0)),      # stacked weights
            pl.BlockSpec((C_all, 1), lambda b, q: (0, 0)),      # stacked biases
            pl.BlockSpec(memory_space=pltpu.MemorySpace.SMEM),  # gamma scalar
        ],
        out_specs=pl.BlockSpec((1, C, TQ), lambda b, q: (b, 0, q)),
        scratch_shapes=[
            pltpu.VMEM((L, Cq), compute_dtype),   # q, transposed
            pltpu.VMEM((Cq, L), compute_dtype),   # k
            pltpu.VMEM((L, C), compute_dtype),    # v, transposed
        ],
        compiler_params=pltpu.CompilerParams(
            dimension_semantics=("parallel", "arbitrary"),
            vmem_limit_bytes=vmem_limit,
        ),
    )(x, x, w_all, b_all, gamma2)


def _reference(x, wq, bq, wk, bk, wv, bv, gamma):
    """Pure-JAX f32 reference mirroring the PyTorch PAM_Module forward."""
    hp = jax.lax.Precision.HIGHEST
    xf = x.astype(jnp.float32)
    q = jnp.einsum('oc,bcl->bol', wq, xf, precision=hp) + bq[None, :, None]
    k = jnp.einsum('oc,bcl->bol', wk, xf, precision=hp) + bk[None, :, None]
    v = jnp.einsum('oc,bcl->bol', wv, xf, precision=hp) + bv[None, :, None]
    energy = jnp.einsum('boi,boj->bij', q, k, precision=hp)      # (B, L, L)
    attn = jax.nn.softmax(energy, axis=-1)
    out = jnp.einsum('bcj,bij->bci', v, attn, precision=hp)      # (B, C, L)
    return gamma * out + xf


if __name__ == "__main__":
    # Small deterministic example consistent with the module:
    # batch=2, in_dim=32 (so C//8 = 4), sequence length L=16, input (B, C, L).
    B, C, L = 2, 32, 16
    Cq = C // 8

    key = jax.random.PRNGKey(0)
    kx, k1, k2, k3, k4, k5, k6 = jax.random.split(key, 7)

    x = jax.random.normal(kx, (B, C, L), dtype=jnp.float32)

    # Conv1d(k=1) default init: U(-1/sqrt(C), 1/sqrt(C)).
    bound = 1.0 / (C ** 0.5)
    wq = jax.random.uniform(k1, (Cq, C), minval=-bound, maxval=bound, dtype=jnp.float32)
    bq = jax.random.uniform(k2, (Cq,), minval=-bound, maxval=bound, dtype=jnp.float32)
    wk = jax.random.uniform(k3, (Cq, C), minval=-bound, maxval=bound, dtype=jnp.float32)
    bk = jax.random.uniform(k4, (Cq,), minval=-bound, maxval=bound, dtype=jnp.float32)
    wv = jax.random.uniform(k5, (C, C), minval=-bound, maxval=bound, dtype=jnp.float32)
    bv = jax.random.uniform(k6, (C,), minval=-bound, maxval=bound, dtype=jnp.float32)

    # PyTorch initializes gamma to 0 (output == x); use a nonzero value so the
    # attention path is actually exercised by the check.
    gamma = jnp.float32(0.5)

    out = pam_module_forward(x, wq, bq, wk, bk, wv, bv, gamma)
    jax.block_until_ready(out)

    ref = _reference(x, wq, bq, wk, bk, wv, bv, gamma)
    assert out.shape == (B, C, L)
    # bf16 MXU operands + approx reciprocal -> relaxed tolerance vs f32 reference.
    assert jnp.allclose(out, ref, atol=2e-2, rtol=2e-2)

    print("KERNEL_OK")
</pallas_src>

<mosaic_0001>
module attributes {stable_mosaic.version = 11 : i64} {
  func.func @_pam_kernel(%arg0: i32, %arg1: i32, %arg2: memref<1x32x16xf32, #tpu.memory_space<vmem>>, %arg3: memref<1x32x16xf32, #tpu.memory_space<vmem>>, %arg4: memref<48x32xf32, #tpu.memory_space<vmem>>, %arg5: memref<48x1xf32, #tpu.memory_space<vmem>>, %arg6: memref<1x1xf32, #tpu.memory_space<smem>>, %arg7: memref<1x32x16xf32, #tpu.memory_space<vmem>>, %arg8: memref<16x4xbf16, #tpu.memory_space<vmem>>, %arg9: memref<4x16xbf16, #tpu.memory_space<vmem>>, %arg10: memref<16x32xbf16, #tpu.memory_space<vmem>>) attributes {dimension_semantics = [#tpu.dimension_semantics<parallel>, #tpu.dimension_semantics<arbitrary>], iteration_bounds = array<i64: 2, 1>, scalar_prefetch = 0 : i64, scratch_operands = 3 : i64, tpu.core_type = #tpu.core_type<tc>, window_params = [{transform_indices = @transform_0, window_bounds = array<i64: 1, 32, 16>}, {transform_indices = @transform_1, window_bounds = array<i64: 1, 32, 16>}, {pipeline_mode = #tpu.pipeline_mode<synchronous>, transform_indices = @transform_2, window_bounds = array<i64: 48, 32>}, {pipeline_mode = #tpu.pipeline_mode<synchronous>, transform_indices = @transform_3, window_bounds = array<i64: 48, 1>}, {transform_indices = @transform_4, window_bounds = array<i64: 1, 1>}, {transform_indices = @transform_5, window_bounds = array<i64: 1, 32, 16>}]} {
    %c0_i32 = arith.constant 0 : i32
    %0 = arith.cmpi eq, %arg1, %c0_i32 : i32
    %1 = arith.extui %0 : i1 to i32
    %c0_i32_0 = arith.constant 0 : i32
    %2 = arith.cmpi ne, %1, %c0_i32_0 : i32
    scf.if %2 {
      %c0_16 = arith.constant 0 : index
      %c0_17 = arith.constant 0 : index
      %32 = vector.load %arg4[%c0_16, %c0_17] : memref<48x32xf32, #tpu.memory_space<vmem>>, vector<48x32xf32>
      %c0_18 = arith.constant 0 : index
      %c0_19 = arith.constant 0 : index
      %c0_20 = arith.constant 0 : index
      %33 = vector.load %arg2[%c0_18, %c0_19, %c0_20] : memref<1x32x16xf32, #tpu.memory_space<vmem>>, vector<1x32x16xf32>
      %34 = vector.shape_cast %33 : vector<1x32x16xf32> to vector<32x16xf32>
      %cst_21 = arith.constant dense<0.000000e+00> : vector<48x16xf32>
      %35 = tpu.matmul %32, %34, %cst_21 {dimension_numbers = #tpu.dot_dimension_numbers<[1], [0], [0], [1], [0, 0, 1, 1], [], []>} : vector<48x32xf32>, vector<32x16xf32>, vector<48x16xf32> -> vector<48x16xf32>
      %c0_22 = arith.constant 0 : index
      %c0_23 = arith.constant 0 : index
      %36 = vector.load %arg5[%c0_22, %c0_23] : memref<48x1xf32, #tpu.memory_space<vmem>>, vector<48x1xf32>
      %37 = vector.broadcast %36 : vector<48x1xf32> to vector<48x16xf32>
      %38 = arith.addf %35, %37 : vector<48x16xf32>
      %39 = vector.extract_strided_slice %38 {offsets = [0, 0], sizes = [4, 16], strides = [1, 1]} : vector<48x16xf32> to vector<4x16xf32>
      %40 = tpu.transpose %39, [1, 0] : vector<4x16xf32> -> vector<16x4xf32>
      %41 = arith.truncf %40 : vector<16x4xf32> to vector<16x4xbf16>
      %c0_24 = arith.constant 0 : index
      %c0_25 = arith.constant 0 : index
      %42 = vector.load %arg8[%c0_24, %c0_25] : memref<16x4xbf16, #tpu.memory_space<vmem>>, vector<16x4xbf16>
      tpu.vector_store %arg8[%c0_24, %c0_25], %41 {strides = array<i32>} : memref<16x4xbf16, #tpu.memory_space<vmem>>, vector<16x4xbf16>,
      %43 = vector.extract_strided_slice %38 {offsets = [8, 0], sizes = [4, 16], strides = [1, 1]} : vector<48x16xf32> to vector<4x16xf32>
      %44 = arith.truncf %43 : vector<4x16xf32> to vector<4x16xbf16>
      %c0_26 = arith.constant 0 : index
      %c0_27 = arith.constant 0 : index
      %45 = vector.load %arg9[%c0_26, %c0_27] : memref<4x16xbf16, #tpu.memory_space<vmem>>, vector<4x16xbf16>
      tpu.vector_store %arg9[%c0_26, %c0_27], %44 {strides = array<i32>} : memref<4x16xbf16, #tpu.memory_space<vmem>>, vector<4x16xbf16>,
      %46 = vector.extract_strided_slice %38 {offsets = [16, 0], sizes = [32, 16], strides = [1, 1]} : vector<48x16xf32> to vector<32x16xf32>
      %47 = tpu.transpose %46, [1, 0] : vector<32x16xf32> -> vector<16x32xf32>
      %48 = arith.truncf %47 : vector<16x32xf32> to vector<16x32xbf16>
      %c0_28 = arith.constant 0 : index
      %c0_29 = arith.constant 0 : index
      %49 = vector.load %arg10[%c0_28, %c0_29] : memref<16x32xbf16, #tpu.memory_space<vmem>>, vector<16x32xbf16>
      tpu.vector_store %arg10[%c0_28, %c0_29], %48 {strides = array<i32>} : memref<16x32xbf16, #tpu.memory_space<vmem>>, vector<16x32xbf16>,
    } else {
    }
    %c16_i32 = arith.constant 16 : i32
    %3 = arith.muli %arg1, %c16_i32 : i32
    %4 = tpu.assume_multiple %3, 16 : i32
    %5 = arith.index_cast %4 : i32 to index
    %c0 = arith.constant 0 : index
    %6 = vector.load %arg8[%5, %c0] : memref<16x4xbf16, #tpu.memory_space<vmem>>, vector<16x4xbf16>
    %c0_1 = arith.constant 0 : index
    %c0_2 = arith.constant 0 : index
    %7 = vector.load %arg9[%c0_1, %c0_2] : memref<4x16xbf16, #tpu.memory_space<vmem>>, vector<4x16xbf16>
    %cst = arith.constant dense<0.000000e+00> : vector<16x16xf32>
    %8 = tpu.matmul %6, %7, %cst {dimension_numbers = #tpu.dot_dimension_numbers<[1], [0], [0], [1], [0, 0, 1, 1], [], []>} : vector<16x4xbf16>, vector<4x16xbf16>, vector<16x16xf32> -> vector<16x16xf32>
    %cst_3 = arith.constant dense<0xFF800000> : vector<16xf32>
    %9 = vector.multi_reduction <maximumf>, %8, %cst_3 [1] : vector<16x16xf32> to vector<16xf32>
    %10 = vector.shape_cast %9 : vector<16xf32> to vector<16x1xf32>
    %11 = vector.broadcast %10 : vector<16x1xf32> to vector<16x16xf32>
    %12 = arith.subf %8, %11 : vector<16x16xf32>
    %13 = math.exp %12 : vector<16x16xf32>
    %cst_4 = arith.constant dense<0.000000e+00> : vector<16xf32>
    %14 = vector.multi_reduction <add>, %13, %cst_4 [1] : vector<16x16xf32> to vector<16xf32>
    %15 = vector.shape_cast %14 : vector<16xf32> to vector<16x1xf32>
    %16 = arith.truncf %13 : vector<16x16xf32> to vector<16x16xbf16>
    %c0_5 = arith.constant 0 : index
    %c0_6 = arith.constant 0 : index
    %17 = vector.load %arg10[%c0_5, %c0_6] : memref<16x32xbf16, #tpu.memory_space<vmem>>, vector<16x32xbf16>
    %cst_7 = arith.constant dense<0.000000e+00> : vector<16x32xf32>
    %18 = tpu.matmul %16, %17, %cst_7 {dimension_numbers = #tpu.dot_dimension_numbers<[1], [0], [0], [1], [0, 0, 1, 1], [], []>} : vector<16x16xbf16>, vector<16x32xbf16>, vector<16x32xf32> -> vector<16x32xf32>
    %c0_8 = arith.constant 0 : index
    %c0_9 = arith.constant 0 : index
    %19 = memref.load %arg6[%c0_8, %c0_9] : memref<1x1xf32, #tpu.memory_space<smem>>
    %20 = tpu.reciprocal %15 {approx = true} : vector<16x1xf32> -> vector<16x1xf32>
    %21 = vector.broadcast %19 : f32 to vector<16x1xf32>
    %22 = arith.mulf %21, %20 : vector<16x1xf32>
    %23 = vector.broadcast %22 : vector<16x1xf32> to vector<16x32xf32>
    %24 = arith.mulf %18, %23 : vector<16x32xf32>
    %25 = tpu.transpose %24, [1, 0] : vector<16x32xf32> -> vector<32x16xf32>
    %c0_10 = arith.constant 0 : index
    %c0_11 = arith.constant 0 : index
    %c0_12 = arith.constant 0 : index
    %26 = vector.load %arg3[%c0_10, %c0_11, %c0_12] : memref<1x32x16xf32, #tpu.memory_space<vmem>>, vector<1x32x16xf32>
    %27 = vector.shape_cast %26 : vector<1x32x16xf32> to vector<32x16xf32>
    %28 = arith.addf %25, %27 : vector<32x16xf32>
    %c0_13 = arith.constant 0 : index
    %c0_14 = arith.constant 0 : index
    %c0_15 = arith.constant 0 : index
    %29 = vector.load %arg7[%c0_13, %c0_14, %c0_15] : memref<1x32x16xf32, #tpu.memory_space<vmem>>, vector<1x32x16xf32>
    %30 = vector.shape_cast %29 : vector<1x32x16xf32> to vector<32x16xf32>
    %31 = vector.shape_cast %28 : vector<32x16xf32> to vector<1x32x16xf32>
    tpu.vector_store %arg7[%c0_13, %c0_14, %c0_15], %31 {strides = array<i32>} : memref<1x32x16xf32, #tpu.memory_space<vmem>>, vector<1x32x16xf32>,
    return
  }
  func.func @transform_0(%arg0: i32, %arg1: i32) -> (i32, i32, i32) {
    %c0_i32 = arith.constant 0 : i32
    %c0_i32_0 = arith.constant 0 : i32
    %c0_i32_1 = arith.constant 0 : i32
    return %arg0, %c0_i32, %c0_i32_0 : i32, i32, i32
  }
  func.func @transform_1(%arg0: i32, %arg1: i32) -> (i32, i32, i32) {
    %c0_i32 = arith.constant 0 : i32
    %c0_i32_0 = arith.constant 0 : i32
    return %arg0, %c0_i32, %arg1 : i32, i32, i32
  }
  func.func @transform_2(%arg0: i32, %arg1: i32) -> (i32, i32) {
    %c0_i32 = arith.constant 0 : i32
    %c0_i32_0 = arith.constant 0 : i32
    %c0_i32_1 = arith.constant 0 : i32
    return %c0_i32, %c0_i32_0 : i32, i32
  }
  func.func @transform_3(%arg0: i32, %arg1: i32) -> (i32, i32) {
    %c0_i32 = arith.constant 0 : i32
    %c0_i32_0 = arith.constant 0 : i32
    %c0_i32_1 = arith.constant 0 : i32
    return %c0_i32, %c0_i32_0 : i32, i32
  }
  func.func @transform_4(%arg0: i32, %arg1: i32) -> (i32, i32) {
    %c0_i32 = arith.constant 0 : i32
    %c0_i32_0 = arith.constant 0 : i32
    %c0_i32_1 = arith.constant 0 : i32
    return %c0_i32, %c0_i32_0 : i32, i32
  }
  func.func @transform_5(%arg0: i32, %arg1: i32) -> (i32, i32, i32) {
    %c0_i32 = arith.constant 0 : i32
    %c0_i32_0 = arith.constant 0 : i32
    return %arg0, %c0_i32, %arg1 : i32, i32, i32
  }
}

</mosaic_0001>

<bundles_post_ra>
// kernel: tpu_custom_call.1
= control target key start
LH: loop header
LB: loop body
LE: loop exit
PB: predicated region body
PF: predicated region fallthrough
CT: control target
= control target key end

     0   :  { %s956_s20 = smov 0   ;;  %s958_s21 = smov 0   ;;  %s1049_s0 = inlined_call_operand.vmem [shape: f32[2,32,16], index: 0, kind: input, shape index: {}]   ;;  %s1050_s1 = inlined_call_operand.vmem [shape: f32[2,32,16], index: 1, kind: input, shape index: {}]   ;;  %s1051_s2 = inlined_call_operand.vmem [shape: f32[48,32], index: 2, kind: input, shape index: {}]   ;;  %s1052_s3 = inlined_call_operand.vmem [shape: f32[48,1], index: 3, kind: input, shape index: {}]   ;;  %s1053_s4 = inlined_call_operand.<no memory space> [shape: f32[1,1], index: 4, kind: input, shape index: {}]   ;;  %s1054_s5 = inlined_call_operand.vmem [shape: f32[2,32,16], index: 5, kind: output, shape index: {}]  }
   0x1   :  { %10 = sst [smem:[#allocation5]] %s1053_s4  ;;  %s960_s22 = smov 0  }
   0x2 LB: > { %s28_s4 = sadd.s32 1, %s914_s21  ;;  %p788_p0 = scmp.ge.s32.totalorder %s918_s22, 1  ;;  %s918_s22 = sphi %s960_s22, %s16_s22   ;;  %s914_s21 = sphi %s958_s21, %s1056_s21   ;;  %s910_s20 = sphi %s956_s20, %s1055_s20  }
   0x3   : > { %p30_p1 = scmp.ge.s32.totalorder %s28_s4, 2  ;;  %p217_p2 = scmp.lt.s32.totalorder %s918_s22, 3 }
   0x5   : > { %s1058_s4 = smov (%p30_p1, %s28_s4), 0  ;;  %p218_p3 = pnand %p788_p0, %p217_p2 }
   0x6   : > { %p256_p4 = scmp.lt.s32.totalorder (!%p218_p3), %s910_s20, 1  ;;  %v282_v0 = vld [vmem:[%s1051_s2] sm:$0xff] (!%p218_p3)  ;;  %vm328_vm0 = vcmask (!%p218_p3), 261120   ;;  %v920_v1 = vmov (!%p218_p3), 0   ;;  %v293_v3 = vld [vmem:[%s1052_s3 + $0x8] sm:$0xff] (!%p218_p3)  ;;  %v295_v10 = vld [vmem:[%s1052_s3 + $0x18] sm:$0xff] (!%p218_p3) }
   0x7   : > { %221 = sbr.rel (%p218_p3) target bundleno = 1148 (0x47c), region = 40  ;;  %830 = vmatprep.mubr.msk.f32.mxu0 (!%p218_p3), %vm328_vm0, %v282_v0  ;;  %886 = vset.pattern.permute.xlu0 (!%p218_p3), %v920_v1  ;;  %v292_v2 = vld [vmem:[%s1052_s3] sm:$0xff] (!%p218_p3)  ;;  %v283_v12 = vld [vmem:[%s1051_s2 + $0x8] sm:$0xff] (!%p218_p3)  ;;  %v284_v13 = vld [vmem:[%s1051_s2 + $0x10] sm:$0xff] (!%p218_p3)  ;;  %v921_v18 = vmov (!%p218_p3), 0.0   ;;  %vm478_vm1 = vcmask (!%p218_p3), 123904  }
   0x8   : > { %300 = vperm.xlu0 (!%p218_p3), %886, %v292_v2   ;;  %v296_v11 = vld [vmem:[%s1052_s3 + $0x20] sm:$0xff] (!%p218_p3)  ;;  %v297_v14 = vld [vmem:[%s1052_s3 + $0x28] sm:$0xff] (!%p218_p3)  ;;  %v285_v15 = vld [vmem:[%s1051_s2 + $0x18] sm:$0xff] (!%p218_p3)  ;;  %839 = vmatprep.subr.bf16.mxu1 (!%p218_p3), %v921_v18  ;;  %vm525_vm2 = vcmask (!%p218_p3), 1041408   ;;  %vm922_vm3 = vmmov (!%p218_p3), 0   ;;  %vm475_vm4 = vcmask (!%p218_p3), 31744  }
   0x9   : > { %v286_v16 = vld [vmem:[%s1051_s2 + $0x20] sm:$0xff] (!%p218_p3)  ;;  %v287_v17 = vld [vmem:[%s1051_s2 + $0x28] sm:$0xff] (!%p218_p3)  ;;  %841 = vmatprep.mubr.msk.bf16.mxu1 (!%p218_p3), %vm922_vm3, %v921_v18  ;;  %v294_v32 = vld [vmem:[%s1052_s3 + $0x10] sm:$0xff] (!%p218_p3)  ;;  %vm570_vm5 = vcmask (!%p218_p3), 130048   ;;  %s635_s29 = sld [smem:[#allocation5]] (!%p218_p3) }
   0xc   : > { %305 = vperm.xlu0 (!%p218_p3), %886, %v293_v3  }
   0xe   : > { %s1060_s20 = smov (!%p256_p4, %s910_s20), 1 }
   0xf   : > { %s981_s27 = sshll.u32 %s1060_s20, 5 }
  0x10   : > { %s260_s7 = scalar_lea.vmem %s1049_s0, %s981_s27  ;;  %315 = vperm.xlu0 %886, %v295_v10   ;;  %s276_s10 = scalar_lea.vmem %s1054_s5, %s981_s27 }
  0x11   : > { %v288_v4 = vld [vmem:[%s260_s7] sm:$0xff]  ;;  %v289_v5 = vld [vmem:[%s260_s7 + $0x8] sm:$0xff]  ;;  %v290_v6 = vld [vmem:[%s260_s7 + $0x10] sm:$0xff] }
  0x12   : > { %v851_v7 = vpack.c.bf16 %v289_v5, %v288_v4  ;;  %v291_v8 = vld [vmem:[%s260_s7 + $0x18] sm:$0xff]  ;;  %v638_v5 = vstv %s635_s29  ;;  %s268_s7 = scalar_lea.vmem %s1050_s1, %s981_s27 }
  0x13   : > { %v855_v9 = vpack.c.bf16 %v291_v8, %v290_v6 }
  0x14   : > { %852 = vmatprep.subr.bf16.mxu0 %v851_v7  ;;  %320 = vperm.xlu0 %886, %v296_v11  }
  0x15   : > { %854 = vmatpush3.bf16.msra.mxu0 %v851_v7 }
  0x16   : > { %856 = vmatprep.subr.bf16.mxu0 %v855_v9 }
  0x18   : > { %325 = vperm.xlu0 %886, %v297_v14  }
  0x19   : > { %858 = vmatpush3.bf16.msra.mxu0 %v855_v9 }
  0x1c   : > { %831 = vmatmul.mubr.msk.f32.vlgmr.msra.gmra.mrb[0].mxu0 %vm328_vm0, %v283_v12 }
  0x1d   : > { %833 = vmatprep.mubr.msk.f32.mxu0 %vm328_vm0, %v284_v13 }
  0x20   : > { %834 = vmatmul.mubr.msk.f32.gmra.mrb[2].mxu0 %vm328_vm0, %v285_v15  ;;  %v675_v15 = vld [vmem:[%s268_s7] sm:$0xff] }
  0x21   : > { %836 = vmatprep.mubr.msk.f32.mxu0 %vm328_vm0, %v286_v16 }
  0x24   : > { %837 = vmatmul.mubr.msk.f32.gmra.mrb[4].mxu0 %vm328_vm0, %v287_v17 }
  0x87   : > { %v301_v19 = vpop.permute.xlu0 %300 }
  0x8b   : > { %v306_v20 = vpop.permute.xlu0 %305 }
  0x8f   : > { %v316_v45 = vpop.permute.xlu0 %315 }
  0x93   : > { %v321_v47 = vpop.permute.xlu0 %320 }
  0x97   : > { %v326_v49 = vpop.permute.xlu0 %325 }
  0xef   : > { %v832_v21 = vpop.f32.mrb[0].mxu0 }
  0xf0   : > { %v419_v22 = vadd.f32 %v832_v21, %v306_v20  ;;  %v413_v23 = vpop.f32.mrb[1].mxu0  ;;  %v677_v21 = vld [vmem:[%s268_s7 + $0x10] sm:$0xff] }
  0xf1   : > { %v414_v24 = vadd.f32 %v413_v23, %v301_v19 }
  0xf2   : > { %v477_v25 = vpack.c.bf16 %v419_v22, %v419_v22 }
  0xf3   : > { %v835_v26 = vpop.f32.mrb[2].mxu0  ;;  %442 = vxpose.xlu1.b32.start.end [1/1] (short) (narrow) %v414_v24, 16  ;;  %v678_v24 = vld [vmem:[%s268_s7 + $0x18] sm:$0xff] }
  0xf4   : > { %479 = vst.msk [vmem:[#allocation3] sm:$0x3] %vm478_vm1, %v477_v25  ;;  %v423_v27 = vpop.f32.mrb[3].mxu0  ;;  %v429_v46 = vadd.f32 %v835_v26, %v316_v45 }
  0xf7   : > { %v838_v28 = vpop.f32.mrb[4].mxu0 }
  0xf8   : > { %v433_v29 = vpop.f32.mrb[5].mxu0  ;;  %v439_v50 = vadd.f32 %v838_v28, %v326_v49 }
  0xf9   : > { %v434_v48 = vadd.f32 %v433_v29, %v321_v47 }
  0xfb   : > { %v520_v30 = vld [vmem:[#allocation3] sm:$0x3] }
  0xfc   : > { %v527_v31 = vsel %vm525_vm2, %v520_v30, 0 }
  0xfd   : > { %840 = vmatpush3.bf16.msra.mxu1 %v527_v31 }
  0xfe   : > { %845 = vmatprep.subr.bf16.mxu1 %v921_v18 }
 0x111   : > { %887 = vset.pattern.permute.xlu1 %v920_v1 }
 0x115   : > { %310 = vperm.xlu1 %887, %v294_v32  }
 0x173   : > { %v458_v33 = vpop.trf.xlu1 }
 0x177   : > { %v459_v34 = vpop.trf.xlu1 }
 0x178   : > { %v474_v35 = vpack.c.bf16 %v459_v34, %v458_v33 }
 0x17a   : > { %476 = vst.msk [vmem:[#allocation2] sm:$0xff] %vm475_vm4, %v474_v35 }
 0x181   : > { %v519_v36 = vld [vmem:[#allocation2] sm:$0xff] }
 0x182   : > { %842 = vmatmul.mubr.msk.bf16.vlgmr.msra.gmra.mrb[0].mxu1 %vm475_vm4, %v519_v36 }
 0x183   : > { %847 = vmatprep.mubr.msk.bf16.mxu1 %vm922_vm3, %v921_v18  ;;  %v676_v18 = vld [vmem:[%s268_s7 + $0x8] sm:$0xff] }
 0x194   : > { %v311_v43 = vpop.permute.xlu1 %310 }
 0x195   : > { %v424_v44 = vadd.f32 %v423_v27, %v311_v43 }
 0x255   : > { %v563_v37 = vpop.f32.mrb[0].mxu1 }
 0x256   : > { %v843_v38 = vpop.f32.mrb[1].mxu1  ;;  %v571_v39 = vsel %vm570_vm5, %v563_v37, -inf }
 0x257   : > { %572 = vmax.xlane.f32.xlu0 %v571_v39  ;;  %v566_v40 = vpop.f32.mrb[2].mxu1 }
 0x258   : > { %v844_v41 = vpop.f32.mrb[3].mxu1  ;;  %v574_v42 = vsel %vm570_vm5, %v566_v40, -inf }
 0x259   : > { %575 = vmax.xlane.f32.xlu1 %v574_v42 }
 0x284   : > { %480 = vxpose.xlu0.b32.start [1/4] (short) (narrow) %v424_v44, 16 }
 0x288   : > { %481 = vxpose.xlu0.b32.cont [2/4] (short) (narrow) %v429_v46, 16 }
 0x28c   : > { %482 = vxpose.xlu0.b32.cont [3/4] (short) (narrow) %v434_v48, 16 }
 0x290   : > { %483 = vxpose.xlu0.b32.end [4/4] (short) (narrow) %v439_v50, 16 }
 0x2e4   : > { %v573_v51 = vpop.xlane.xlu0 %572 }
 0x2e5   : > { %v577_v52 = vsub.f32 %v563_v37, %v573_v51 }
 0x2e6   : > { %v576_v53 = vpop.xlane.xlu1 %575 }
 0x2e7   : > { %v579_v54 = vmul.f32 1.442695, %v577_v52  ;;  %v578_v55 = vsub.f32 %v566_v40, %v576_v53 }
 0x2e9   : > { %888 = vpow2.f32 %v579_v54  ;;  %v581_v56 = vmul.f32 1.442695, %v578_v55 }
 0x2eb   : > { %890 = vpow2.f32 %v581_v56 }
 0x2f3   : > { %v889_v57 = vpop.eup %888 }
 0x2f4   : > { %v583_v58 = vsel %vm570_vm5, %v889_v57, 0.0 }
 0x2f5   : > { %v891_v59 = vpop.eup %890  ;;  %584 = vadd.xlane.f32.xlu1 %v583_v58 }
 0x2f6   : > { %v589_v60 = vpack.c.bf16 %v891_v59, %v889_v57  ;;  %v586_v61 = vsel %vm570_vm5, %v891_v59, 0.0 }
 0x2f9   : > { %587 = vadd.xlane.f32.xlu1 %v586_v61 }
 0x304   : > { %v496_v62 = vpop.trf.xlu0 }
 0x308   : > { %v497_v63 = vpop.trf.xlu0 }
 0x309   : > { %v512_v0 = vpack.c.bf16 %v497_v63, %v496_v62 }
 0x30b   : > { %513 = vst.msk [vmem:[#allocation4] sm:$0xff] %vm328_vm0, %v512_v0 }
 0x312   : > { %v590_v1 = vld [vmem:[#allocation4] sm:$0xff] }
 0x313   : > { %846 = vmatpush3.bf16.msra.mxu1 %v590_v1 }
 0x316   : > { %848 = vmatmul.mubr.msk.bf16.vlgmr.msra.gmra.mrb[4].mxu1 %vm570_vm5, %v589_v60 }
 0x382   : > { %v585_v2 = vpop.xlane.xlu1 %584 }
 0x383   : > { %892 = vrcp.f32 %v585_v2 }
 0x386   : > { %v588_v3 = vpop.xlane.xlu1 %587 }
 0x387   : > { %894 = vrcp.f32 %v588_v3 }
 0x38d   : > { %v893_v4 = vpop.eup %892 }
 0x38e   : > { %v639_v6 = vmul.f32 %v893_v4, %v638_v5 }
 0x391   : > { %v895_v7 = vpop.eup %894 }
 0x392   : > { %v640_v12 = vmul.f32 %v895_v7, %v638_v5 }
 0x3e9   : > { %v628_v8 = vpop.f32.mrb[4].mxu1 }
 0x3ea   : > { %v641_v9 = vmul.f32 %v639_v6, %v628_v8  ;;  %v849_v10 = vpop.f32.mrb[5].mxu1 }
 0x3eb   : > { %v631_v11 = vpop.f32.mrb[6].mxu1 }
 0x3ec   : > { %v850_v13 = vpop.f32.mrb[7].mxu1  ;;  %643 = vxpose.xlu1.b32.start [1/2] (short) (narrow) %v641_v9, 32  ;;  %v642_v14 = vmul.f32 %v640_v12, %v631_v11 }
 0x3f0   : > { %644 = vxpose.xlu1.b32.end [2/2] (short) (narrow) %v642_v14, 32 }
 0x46c   : > { %v659_v16 = vpop.trf.xlu1 }
 0x46d   : > { %v679_v17 = vadd.f32 %v675_v15, %v659_v16 }
 0x46f   : > { %683 = vst.msk [vmem:[%s276_s10] sm:$0xff] %vm570_vm5, %v679_v17 }
 0x470   : > { %v660_v19 = vpop.trf.xlu1 }
 0x471   : > { %v680_v20 = vadd.f32 %v676_v18, %v660_v19 }
 0x473   : > { %684 = vst.msk [vmem:[%s276_s10 + $0x8] sm:$0xff] %vm570_vm5, %v680_v20 }
 0x474   : > { %v661_v22 = vpop.trf.xlu1 }
 0x475   : > { %v681_v23 = vadd.f32 %v677_v21, %v661_v22 }
 0x477   : > { %685 = vst.msk [vmem:[%s276_s10 + $0x10] sm:$0xff] %vm570_vm5, %v681_v23 }
 0x478   : > { %v662_v25 = vpop.trf.xlu1 }
 0x479   : > { %v682_v26 = vadd.f32 %v678_v24, %v662_v25 }
 0x47b   : > { %686 = vst.msk [vmem:[%s276_s10 + $0x18] sm:$0xff] %vm570_vm5, %v682_v26 }
 0x47c PF: > { %s16_s22 = sadd.s32 1, %s918_s22   ;;  %s1055_s20 = smov %s914_s21 }
 0x47d   : > { %p13_p5 = scmp.ge.s32.totalorder %s16_s22, 4   ;;  %s1056_s21 = smov %s1058_s4 }
 0x47f   :  { %15 = sbr.rel (!%p13_p5) target bundleno = 2 (0x2), region = 78 }

</bundles_post_ra>
